<compile_context>
chip_gen: v7x
topology: tpu7x:2x2x1
jax: 0.10.0
libtpu: 0.0.40
codegen_flags: <defaults>
</compile_context>

<pallas_src>
import jax
import jax.numpy as jnp
from jax import lax
from jax.experimental import pallas as pl
from jax.experimental.pallas import tpu as pltpu

_MiB = 1024 * 1024
_SMALL_INPUT_BYTES = 1 * _MiB          # below this, fused XLA beats a kernel launch
_LANE_CANDIDATES = (1024, 512, 256, 128)


def _num_tensorcores():
    """2 TensorCores per chip on v7x, 1 on v5e/v6e. Defaults to 1 on doubt."""
    try:
        kind = jax.devices()[0].device_kind.lower().replace(" ", "")
        if "v7" in kind or "tpu7" in kind:
            return 2
    except Exception:
        pass
    return 1


def _vmem_capacity_bytes():
    try:
        return int(pltpu.get_tpu_info().vmem_capacity_bytes)
    except Exception:
        return 64 * _MiB               # v7x-safe default


def _make_sse_kernel(rows, tile_rows, steps, lane, needs_mask):
    """Builds the streaming sum-of-squared-error kernel (all params static)."""

    def kernel(x_ref, xhat_ref, out_ref, acc_ref):
        c = pl.program_id(0)           # core chunk
        i = pl.program_id(1)           # step within this core's chunk

        @pl.when(i == 0)
        def _():
            acc_ref[...] = jnp.zeros_like(acc_ref)

        d = xhat_ref[...].astype(jnp.float32) - x_ref[...].astype(jnp.float32)
        sq = d * d
        if needs_mask:
            # Zero out rows past the valid extent (last / over-covered tiles).
            row0 = (c * steps + i) * tile_rows
            rid = row0 + lax.broadcasted_iota(jnp.int32, sq.shape, 0)
            sq = jnp.where(rid < rows, sq, 0.0)

        # (tile_rows, lane) -> (tile_rows//8, 8, lane); summing the leading
        # axis is pure VPU adds (no lane crossing) into a vreg-shaped acc.
        acc_ref[...] += jnp.sum(sq.reshape(tile_rows // 8, 8, lane), axis=0)

        @pl.when(i == pl.num_programs(1) - 1)
        def _():
            out_ref[0] = acc_ref[...]

    return kernel


def _sse_pallas(x, x_hat):
    """sum((x_hat - x)^2) via a streaming Pallas reduction.

    Returns None when the shape is unsuitable (caller falls back to XLA)."""
    total = x.size
    itemsize = jnp.dtype(x.dtype).itemsize
    pack = max(8, 32 // itemsize)      # native sublane pack: f32=8, bf16=16, i8=32

    # Lane width: largest multiple of 128 that divides the element count
    # exactly (metadata-only reshape, no pad copy) and leaves >= pack rows.
    lane = None
    for cand in _LANE_CANDIDATES:
        if total % cand == 0 and total // cand >= pack:
            lane = cand
            break
    if lane is None:
        return None                    # caller uses the plain-JAX path
    rows = total // lane

    vmem_cap = _vmem_capacity_bytes()
    max_tile_bytes = 8 * _MiB if vmem_cap >= 96 * _MiB else 4 * _MiB
    max_tile_rows = max(pack, (max_tile_bytes // (lane * itemsize)) // pack * pack)
    tile_rows = min(max_tile_rows, (rows // pack) * pack)   # never exceeds rows

    num_cores = _num_tensorcores()
    if rows < 2 * tile_rows:
        num_cores = 1                  # not enough tiles to shard across cores

    steps = pl.cdiv(rows, num_cores * tile_rows)
    needs_mask = num_cores * steps * tile_rows > rows

    # Metadata-only reshape to a lane-dense 2-D slab (no jnp.pad, no copies).
    x2 = jnp.ravel(x).reshape(rows, lane)
    xh2 = jnp.ravel(x_hat).reshape(rows, lane)

    tile_in_bytes = tile_rows * lane * itemsize
    tile_f32_bytes = tile_rows * lane * 4
    # 2 inputs x 2 pipeline buffers (input dtype) + ~3 tile-sized f32
    # temporaries (upcast / diff / square) + headroom; stay under physical VMEM.
    vmem_limit = 4 * tile_in_bytes + 3 * tile_f32_bytes + 2 * _MiB
    vmem_limit = int(max(16 * _MiB, min(vmem_limit, vmem_cap - 8 * _MiB)))

    kernel = _make_sse_kernel(rows, tile_rows, steps, lane, needs_mask)

    partials = pl.pallas_call(
        kernel,
        out_shape=jax.ShapeDtypeStruct((num_cores, 8, lane), jnp.float32),
        grid_spec=pltpu.PrefetchScalarGridSpec(
            num_scalar_prefetch=0,
            grid=(num_cores, steps),
            in_specs=[
                pl.BlockSpec((tile_rows, lane), lambda c, i: (c * steps + i, 0)),
                pl.BlockSpec((tile_rows, lane), lambda c, i: (c * steps + i, 0)),
            ],
            out_specs=pl.BlockSpec((1, 8, lane), lambda c, i: (c, 0, 0)),
            scratch_shapes=[pltpu.VMEM((8, lane), jnp.float32)],
        ),
        compiler_params=pltpu.CompilerParams(
            dimension_semantics=("parallel", "arbitrary"),
            vmem_limit_bytes=vmem_limit,
        ),
    )(x2, xh2)

    return jnp.sum(partials)


def _vae_loss_impl(x, mu, sigma, x_hat, *, force_pallas=False):
    """Forward pass of VAELoss (matches the PyTorch reference)."""
    batch_size = x.shape[0]

    in_bytes = x.size * jnp.dtype(x.dtype).itemsize
    sse = None
    if force_pallas or in_bytes >= _SMALL_INPUT_BYTES:
        sse = _sse_pallas(x, x_hat)
    if sse is None:
        # Small-input fast path (or a shape the kernel cannot tile cleanly):
        # one fused XLA elementwise+reduce beats a kernel launch here.
        d = x_hat.astype(jnp.float32) - x.astype(jnp.float32)
        sse = jnp.sum(d * d)

    # KL term over (B, Z) is microseconds of work -> plain JAX (fused by jit).
    mu32 = mu.astype(jnp.float32)
    sg32 = sigma.astype(jnp.float32)
    s2 = sg32 * sg32
    kl = -jnp.sum(1.0 + jnp.log(s2) - mu32 * mu32 - s2)

    return (sse + kl) / jnp.float32(batch_size)


vae_loss = jax.jit(_vae_loss_impl, static_argnames=("force_pallas",))


def vae_loss_ref(x, mu, sigma, x_hat):
    b = x.shape[0]
    l1 = jnp.sum((x_hat - x) ** 2)
    l2 = -jnp.sum(1.0 + jnp.log(sigma ** 2) - mu ** 2 - sigma ** 2)
    return (l1 + l2) / b


if __name__ == "__main__":
    key = jax.random.PRNGKey(0)
    k1, k2, k3, k4 = jax.random.split(key, 4)

    B, C, H, W = 2, 4, 16, 16   # NCHW image tensors
    Z = 32                      # latent dim

    x = jax.random.normal(k1, (B, C, H, W), dtype=jnp.float32)
    x_hat = jax.random.normal(k2, (B, C, H, W), dtype=jnp.float32)
    mu = jax.random.normal(k3, (B, Z), dtype=jnp.float32)
    # sigma must be positive for log(sigma^2)
    sigma = jax.random.uniform(k4, (B, Z), dtype=jnp.float32,
                               minval=0.5, maxval=1.5)

    ref = jax.block_until_ready(vae_loss_ref(x, mu, sigma, x_hat))

    # Force the Pallas SSE kernel even at this small size (exercise the kernel).
    loss_kernel = jax.block_until_ready(
        vae_loss(x, mu, sigma, x_hat, force_pallas=True))
    # Auto path (takes the small-input fused-XLA fast path at this size).
    loss_auto = jax.block_until_ready(vae_loss(x, mu, sigma, x_hat))

    assert jnp.allclose(loss_kernel, ref, rtol=1e-5, atol=1e-5), (loss_kernel, ref)
    assert jnp.allclose(loss_auto, ref, rtol=1e-5, atol=1e-5), (loss_auto, ref)
    print("KERNEL_OK")
</pallas_src>

<mosaic_0001>
module attributes {stable_mosaic.version = 11 : i64} {
  func.func @kernel(%arg0: i32, %arg1: i32, %arg2: memref<8x256xf32, #tpu.memory_space<vmem>>, %arg3: memref<8x256xf32, #tpu.memory_space<vmem>>, %arg4: memref<1x8x256xf32, #tpu.memory_space<vmem>>, %arg5: memref<8x256xf32, #tpu.memory_space<vmem>>) attributes {dimension_semantics = [#tpu.dimension_semantics<parallel>, #tpu.dimension_semantics<arbitrary>], iteration_bounds = array<i64: 1, 1>, scalar_prefetch = 0 : i64, scratch_operands = 1 : i64, tpu.core_type = #tpu.core_type<tc>, window_params = [{transform_indices = @transform_0, window_bounds = array<i64: 8, 256>}, {transform_indices = @transform_1, window_bounds = array<i64: 8, 256>}, {transform_indices = @transform_2, window_bounds = array<i64: 1, 8, 256>}]} {
    %c0_i32 = arith.constant 0 : i32
    %0 = arith.cmpi eq, %arg1, %c0_i32 : i32
    %1 = arith.extui %0 : i1 to i32
    %c0_i32_0 = arith.constant 0 : i32
    %2 = arith.cmpi ne, %1, %c0_i32_0 : i32
    scf.if %2 {
      %cst_10 = arith.constant 0.000000e+00 : f32
      %15 = vector.broadcast %cst_10 : f32 to vector<8x256xf32>
      %c0_11 = arith.constant 0 : index
      %c0_12 = arith.constant 0 : index
      %16 = vector.load %arg5[%c0_11, %c0_12] : memref<8x256xf32, #tpu.memory_space<vmem>>, vector<8x256xf32>
      tpu.vector_store %arg5[%c0_11, %c0_12], %15 {strides = array<i32>} : memref<8x256xf32, #tpu.memory_space<vmem>>, vector<8x256xf32>,
    } else {
    }
    %c0 = arith.constant 0 : index
    %c0_1 = arith.constant 0 : index
    %3 = vector.load %arg3[%c0, %c0_1] : memref<8x256xf32, #tpu.memory_space<vmem>>, vector<8x256xf32>
    %c0_2 = arith.constant 0 : index
    %c0_3 = arith.constant 0 : index
    %4 = vector.load %arg2[%c0_2, %c0_3] : memref<8x256xf32, #tpu.memory_space<vmem>>, vector<8x256xf32>
    %5 = arith.subf %3, %4 : vector<8x256xf32>
    %6 = arith.mulf %5, %5 : vector<8x256xf32>
    %c0_4 = arith.constant 0 : index
    %c0_5 = arith.constant 0 : index
    %7 = vector.load %arg5[%c0_4, %c0_5] : memref<8x256xf32, #tpu.memory_space<vmem>>, vector<8x256xf32>
    %8 = vector.shape_cast %6 : vector<8x256xf32> to vector<1x8x256xf32>
    %cst = arith.constant dense<0.000000e+00> : vector<8x256xf32>
    %9 = vector.multi_reduction <add>, %8, %cst [0] : vector<1x8x256xf32> to vector<8x256xf32>
    %10 = arith.addf %7, %9 : vector<8x256xf32>
    %c0_6 = arith.constant 0 : index
    %c0_7 = arith.constant 0 : index
    %11 = vector.load %arg5[%c0_6, %c0_7] : memref<8x256xf32, #tpu.memory_space<vmem>>, vector<8x256xf32>
    tpu.vector_store %arg5[%c0_6, %c0_7], %10 {strides = array<i32>} : memref<8x256xf32, #tpu.memory_space<vmem>>, vector<8x256xf32>,
    %c0_i32_8 = arith.constant 0 : i32
    %12 = arith.cmpi eq, %arg1, %c0_i32_8 : i32
    %13 = arith.extui %12 : i1 to i32
    %c0_i32_9 = arith.constant 0 : i32
    %14 = arith.cmpi ne, %13, %c0_i32_9 : i32
    scf.if %14 {
      %c0_10 = arith.constant 0 : index
      %c0_11 = arith.constant 0 : index
      %15 = vector.load %arg5[%c0_10, %c0_11] : memref<8x256xf32, #tpu.memory_space<vmem>>, vector<8x256xf32>
      %c0_12 = arith.constant 0 : index
      %c0_13 = arith.constant 0 : index
      %c0_14 = arith.constant 0 : index
      %16 = vector.load %arg4[%c0_12, %c0_13, %c0_14] : memref<1x8x256xf32, #tpu.memory_space<vmem>>, vector<1x8x256xf32>
      %17 = vector.shape_cast %16 : vector<1x8x256xf32> to vector<8x256xf32>
      %18 = vector.shape_cast %15 : vector<8x256xf32> to vector<1x8x256xf32>
      tpu.vector_store %arg4[%c0_12, %c0_13, %c0_14], %18 {strides = array<i32>} : memref<1x8x256xf32, #tpu.memory_space<vmem>>, vector<1x8x256xf32>,
    } else {
    }
    return
  }
  func.func @transform_0(%arg0: i32, %arg1: i32) -> (i32, i32) {
    %c1_i32 = arith.constant 1 : i32
    %0 = arith.muli %arg0, %c1_i32 : i32
    %1 = arith.addi %0, %arg1 : i32
    %c0_i32 = arith.constant 0 : i32
    %c0_i32_0 = arith.constant 0 : i32
    return %1, %c0_i32 : i32, i32
  }
  func.func @transform_1(%arg0: i32, %arg1: i32) -> (i32, i32) {
    %c1_i32 = arith.constant 1 : i32
    %0 = arith.muli %arg0, %c1_i32 : i32
    %1 = arith.addi %0, %arg1 : i32
    %c0_i32 = arith.constant 0 : i32
    %c0_i32_0 = arith.constant 0 : i32
    return %1, %c0_i32 : i32, i32
  }
  func.func @transform_2(%arg0: i32, %arg1: i32) -> (i32, i32, i32) {
    %c0_i32 = arith.constant 0 : i32
    %c0_i32_0 = arith.constant 0 : i32
    %c0_i32_1 = arith.constant 0 : i32
    return %arg0, %c0_i32, %c0_i32_0 : i32, i32, i32
  }
}

</mosaic_0001>

<bundles_post_ra>
// kernel: _vae_loss_impl.1
= control target key start
LH: loop header
LB: loop body
LE: loop exit
PB: predicated region body
PF: predicated region fallthrough
CT: control target
= control target key end

     0   :  { %s129_s0 = inlined_call_operand.vmem [shape: f32[8,256], index: 0, kind: input, shape index: {}]   ;;  %s130_s1 = inlined_call_operand.vmem [shape: f32[8,256], index: 1, kind: input, shape index: {}]   ;;  %s131_s2 = inlined_call_operand.vmem [shape: f32[1,8,256], index: 2, kind: output, shape index: {}]  }
   0x1   :  { %v57_v0 = vld [vmem:[%s130_s1] sm:$0xff]  ;;  %v58_v2 = vld [vmem:[%s130_s1 + $0x8] sm:$0xff] }
   0x2   :  { %v59_v1 = vld [vmem:[%s129_s0] sm:$0xff]  ;;  %v60_v4 = vld [vmem:[%s129_s0 + $0x8] sm:$0xff] }
   0x3   :  { %v61_v3 = vsub.f32 %v57_v0, %v59_v1  ;;  %v62_v5 = vsub.f32 %v58_v2, %v60_v4 }
   0x5   :  { %v63_v6 = vmul.f32 %v61_v3, %v61_v3  ;;  %v64_v7 = vmul.f32 %v62_v5, %v62_v5 }
   0x7   :  { %78 = vst [vmem:[%s131_s2] sm:$0xff] %v63_v6  ;;  %79 = vst [vmem:[%s131_s2 + $0x8] sm:$0xff] %v64_v7 }

</bundles_post_ra>
